<compile_context>
chip_gen: v5e
topology: v5e:2x2
jax: 0.10.0
libtpu: 0.0.40
codegen_flags: <defaults>
</compile_context>

<pallas_src>
import jax
import jax.numpy as jnp
from jax.experimental import pallas as pl
from jax.experimental.pallas import tpu as pltpu


def batch_gcn_kernel(adj_ref, x_ref, w_ref, b_ref, out_ref):
    adj = adj_ref[...]      # (Bt, N, N)   f32
    x = x_ref[...]          # (Bt, N, F_in) f32
    w = w_ref[...]          # (F_in, F_out_p) f32 (lane-dense, possibly padded)
    bias = b_ref[...]       # (1, F_out_p) f32

    Bt, N, F_in = x.shape
    F_out_p = w.shape[1]

    # degree_version='v1': count of strictly-positive entries per row.
    deg = jnp.sum((adj > 0).astype(jnp.float32), axis=-1, keepdims=True)  # (Bt,N,1)
    # Guard isolated nodes: rsqrt(0) would be inf and poison the scaling.
    d = jnp.where(deg > 0, jax.lax.rsqrt(deg), 0.0)                       # (Bt,N,1)

    # diag(d) @ A @ diag(d) @ x  ==  d ⊙ (A @ (d ⊙ x))  -- no NxN temporary.
    if F_out_p < F_in:
        # Apply W first: the N^2 matmul then runs at the narrower width F_out_p.
        h = jnp.dot(x.reshape(Bt * N, F_in), w,
                    preferred_element_type=jnp.float32)                   # (Bt*N, F_out_p)
        h = h.reshape(Bt, N, F_out_p)
        out = d * jnp.einsum('bij,bjf->bif', adj, h * d,
                             preferred_element_type=jnp.float32)          # (Bt,N,F_out_p)
    else:
        h = d * jnp.einsum('bij,bjf->bif', adj, x * d,
                           preferred_element_type=jnp.float32)            # (Bt,N,F_in)
        out = jnp.dot(h.reshape(Bt * N, F_in), w,
                      preferred_element_type=jnp.float32)                 # (Bt*N, F_out_p)
        out = out.reshape(Bt, N, F_out_p)

    out_ref[...] = (out + bias).astype(out_ref.dtype)


def batch_gcn_conv(batch_ft_mat, batch_adj, weight, bias, *, batch_tile=None):
    """batch_ft_mat: [B, N, F_in], batch_adj: [B, N, N], weight: [F_in, F_out]."""
    B, N, F_in = batch_ft_mat.shape
    F_out = weight.shape[1]

    # Lane-dense output: pad F_out up to a multiple of 128 (zeros in W / bias),
    # slice the padding off in the wrapper.
    F_out_p = ((F_out + 127) // 128) * 128
    if F_out_p != F_out:
        weight_p = jnp.zeros((F_in, F_out_p), weight.dtype).at[:, :F_out].set(weight)
        bias_p = jnp.zeros((F_out_p,), bias.dtype).at[:F_out].set(bias)
    else:
        weight_p, bias_p = weight, bias
    bias2d = bias_p.reshape(1, F_out_p)

    # Pick how many graphs to process per grid step (largest divisor of B whose
    # double-buffered working set stays within a conservative VMEM budget).
    if batch_tile is None:
        budget = 24 * 1024 * 1024
        per_graph = 4 * (N * N + N * F_in + N * F_out_p)   # f32 bytes per graph
        batch_tile = 1
        for bt in range(1, B + 1):
            if B % bt == 0 and 2 * bt * per_graph <= budget:
                batch_tile = bt
    Bt = batch_tile

    out = pl.pallas_call(
        batch_gcn_kernel,
        out_shape=jax.ShapeDtypeStruct((B, N, F_out_p), batch_ft_mat.dtype),
        grid_spec=pltpu.PrefetchScalarGridSpec(
            num_scalar_prefetch=0,
            grid=(B // Bt,),
            in_specs=[
                pl.BlockSpec((Bt, N, N), lambda b: (b, 0, 0)),        # adj tile
                pl.BlockSpec((Bt, N, F_in), lambda b: (b, 0, 0)),     # x tile
                pl.BlockSpec((F_in, F_out_p), lambda b: (0, 0)),      # weight (shared)
                pl.BlockSpec((1, F_out_p), lambda b: (0, 0)),         # bias (shared)
            ],
            out_specs=pl.BlockSpec((Bt, N, F_out_p), lambda b: (b, 0, 0)),
        ),
        compiler_params=pltpu.CompilerParams(
            dimension_semantics=("parallel",),
            vmem_limit_bytes=32 * 1024 * 1024,   # safe on v5e/v6e/v7x
        ),
    )(batch_adj, batch_ft_mat, weight_p, bias2d)

    if F_out_p != F_out:
        out = out[:, :, :F_out]
    return out


if __name__ == "__main__":
    key = jax.random.PRNGKey(0)
    B, N, F_in, F_out = 2, 8, 16, 32
    k1, k2, k3, k4 = jax.random.split(key, 4)

    x = jax.random.normal(k1, (B, N, F_in), dtype=jnp.float32)

    # Random 0/1 adjacency with guaranteed self-loops (no zero-degree rows).
    adj_rand = (jax.random.uniform(k2, (B, N, N)) > 0.5).astype(jnp.float32)
    eye = jnp.eye(N, dtype=jnp.float32)[None]
    adj = jnp.clip(adj_rand + eye, 0.0, 1.0)

    # GCNConv init_type='v1': uniform(-1/in_channels, 1/in_channels) for W and b.
    bound = 1.0 / F_in
    weight = jax.random.uniform(k3, (F_in, F_out), minval=-bound, maxval=bound,
                                dtype=jnp.float32)
    bias = jax.random.uniform(k4, (F_out,), minval=-bound, maxval=bound,
                              dtype=jnp.float32)

    out = jax.block_until_ready(batch_gcn_conv(x, adj, weight, bias))

    # Pure-JAX reference for correctness.
    deg = jnp.sum((adj > 0).astype(jnp.float32), axis=2)          # [B, N]
    d = jnp.where(deg > 0, deg ** -0.5, 0.0)
    lap = adj * d[:, :, None] * d[:, None, :]                     # [B, N, N]
    ref = jnp.einsum('bnm,bmf->bnf', lap, x) @ weight + bias      # [B, N, F_out]

    assert out.shape == (B, N, F_out)
    assert jnp.allclose(out, ref, atol=1e-5, rtol=1e-5)
    print("KERNEL_OK")
</pallas_src>

<mosaic_0001>
module attributes {stable_mosaic.version = 11 : i64} {
  func.func @batch_gcn_kernel(%arg0: i32, %arg1: memref<2x8x8xf32, #tpu.memory_space<vmem>>, %arg2: memref<2x8x16xf32, #tpu.memory_space<vmem>>, %arg3: memref<16x128xf32, #tpu.memory_space<vmem>>, %arg4: memref<1x128xf32, #tpu.memory_space<vmem>>, %arg5: memref<2x8x128xf32, #tpu.memory_space<vmem>>) attributes {dimension_semantics = [#tpu.dimension_semantics<parallel>], iteration_bounds = array<i64: 1>, scalar_prefetch = 0 : i64, scratch_operands = 0 : i64, tpu.core_type = #tpu.core_type<tc>, window_params = [{transform_indices = @transform_0, window_bounds = array<i64: 2, 8, 8>}, {transform_indices = @transform_1, window_bounds = array<i64: 2, 8, 16>}, {pipeline_mode = #tpu.pipeline_mode<synchronous>, transform_indices = @transform_2, window_bounds = array<i64: 16, 128>}, {pipeline_mode = #tpu.pipeline_mode<synchronous>, transform_indices = @transform_3, window_bounds = array<i64: 1, 128>}, {transform_indices = @transform_4, window_bounds = array<i64: 2, 8, 128>}]} {
    %c0 = arith.constant 0 : index
    %c0_0 = arith.constant 0 : index
    %c0_1 = arith.constant 0 : index
    %0 = vector.load %arg1[%c0, %c0_0, %c0_1] : memref<2x8x8xf32, #tpu.memory_space<vmem>>, vector<2x8x8xf32>
    %c0_2 = arith.constant 0 : index
    %c0_3 = arith.constant 0 : index
    %c0_4 = arith.constant 0 : index
    %1 = vector.load %arg2[%c0_2, %c0_3, %c0_4] : memref<2x8x16xf32, #tpu.memory_space<vmem>>, vector<2x8x16xf32>
    %c0_5 = arith.constant 0 : index
    %c0_6 = arith.constant 0 : index
    %2 = vector.load %arg3[%c0_5, %c0_6] : memref<16x128xf32, #tpu.memory_space<vmem>>, vector<16x128xf32>
    %c0_7 = arith.constant 0 : index
    %c0_8 = arith.constant 0 : index
    %3 = vector.load %arg4[%c0_7, %c0_8] : memref<1x128xf32, #tpu.memory_space<vmem>>, vector<1x128xf32>
    %cst = arith.constant 0.000000e+00 : f32
    %4 = vector.broadcast %cst : f32 to vector<2x8x8xf32>
    %5 = arith.cmpf ogt, %0, %4 : vector<2x8x8xf32>
    %6 = arith.extui %5 : vector<2x8x8xi1> to vector<2x8x8xi32>
    %7 = arith.sitofp %6 : vector<2x8x8xi32> to vector<2x8x8xf32>
    %cst_9 = arith.constant dense<0.000000e+00> : vector<2x8xf32>
    %8 = vector.multi_reduction <add>, %7, %cst_9 [2] : vector<2x8x8xf32> to vector<2x8xf32>
    %9 = vector.shape_cast %8 : vector<2x8xf32> to vector<2x8x1xf32>
    %cst_10 = arith.constant 0.000000e+00 : f32
    %10 = vector.broadcast %cst_10 : f32 to vector<2x8x1xf32>
    %11 = arith.cmpf ogt, %9, %10 : vector<2x8x1xf32>
    %12 = math.rsqrt %9 : vector<2x8x1xf32>
    %cst_11 = arith.constant 0.000000e+00 : f32
    %13 = vector.broadcast %cst_11 : f32 to vector<2x8x1xf32>
    %14 = arith.select %11, %12, %13 : vector<2x8x1xi1>, vector<2x8x1xf32>
    %15 = vector.broadcast %14 : vector<2x8x1xf32> to vector<2x8x16xf32>
    %16 = arith.mulf %1, %15 : vector<2x8x16xf32>
    "tpu.trace_start"() <{level = 10 : i32, message = "bij,bjf->bif"}> : () -> ()
    %cst_12 = arith.constant dense<0.000000e+00> : vector<2x8x16xf32>
    %17 = tpu.matmul %0, %16, %cst_12 {dimension_numbers = #tpu.dot_dimension_numbers<[2], [1], [1], [2], [0, 0, 0, 1, 1, 2], [0], [0]>} : vector<2x8x8xf32>, vector<2x8x16xf32>, vector<2x8x16xf32> -> vector<2x8x16xf32>
    "tpu.trace_stop"() : () -> ()
    %18 = vector.broadcast %14 : vector<2x8x1xf32> to vector<2x8x16xf32>
    %19 = arith.mulf %18, %17 : vector<2x8x16xf32>
    %20 = vector.shape_cast %19 : vector<2x8x16xf32> to vector<16x16xf32>
    %cst_13 = arith.constant dense<0.000000e+00> : vector<16x128xf32>
    %21 = tpu.matmul %20, %2, %cst_13 {dimension_numbers = #tpu.dot_dimension_numbers<[1], [0], [0], [1], [0, 0, 1, 1], [], []>} : vector<16x16xf32>, vector<16x128xf32>, vector<16x128xf32> -> vector<16x128xf32>
    %22 = vector.shape_cast %21 : vector<16x128xf32> to vector<2x8x128xf32>
    %23 = vector.shape_cast %3 : vector<1x128xf32> to vector<1x1x128xf32>
    %24 = vector.broadcast %23 : vector<1x1x128xf32> to vector<2x8x128xf32>
    %25 = arith.addf %22, %24 : vector<2x8x128xf32>
    %c0_14 = arith.constant 0 : index
    %c0_15 = arith.constant 0 : index
    %c0_16 = arith.constant 0 : index
    %26 = vector.load %arg5[%c0_14, %c0_15, %c0_16] : memref<2x8x128xf32, #tpu.memory_space<vmem>>, vector<2x8x128xf32>
    tpu.vector_store %arg5[%c0_14, %c0_15, %c0_16], %25 {strides = array<i32>} : memref<2x8x128xf32, #tpu.memory_space<vmem>>, vector<2x8x128xf32>,
    return
  }
  func.func @transform_0(%arg0: i32) -> (i32, i32, i32) {
    %c0_i32 = arith.constant 0 : i32
    %c0_i32_0 = arith.constant 0 : i32
    %c0_i32_1 = arith.constant 0 : i32
    return %arg0, %c0_i32, %c0_i32_0 : i32, i32, i32
  }
  func.func @transform_1(%arg0: i32) -> (i32, i32, i32) {
    %c0_i32 = arith.constant 0 : i32
    %c0_i32_0 = arith.constant 0 : i32
    %c0_i32_1 = arith.constant 0 : i32
    return %arg0, %c0_i32, %c0_i32_0 : i32, i32, i32
  }
  func.func @transform_2(%arg0: i32) -> (i32, i32) {
    %c0_i32 = arith.constant 0 : i32
    %c0_i32_0 = arith.constant 0 : i32
    %c0_i32_1 = arith.constant 0 : i32
    return %c0_i32, %c0_i32_0 : i32, i32
  }
  func.func @transform_3(%arg0: i32) -> (i32, i32) {
    %c0_i32 = arith.constant 0 : i32
    %c0_i32_0 = arith.constant 0 : i32
    %c0_i32_1 = arith.constant 0 : i32
    return %c0_i32, %c0_i32_0 : i32, i32
  }
  func.func @transform_4(%arg0: i32) -> (i32, i32, i32) {
    %c0_i32 = arith.constant 0 : i32
    %c0_i32_0 = arith.constant 0 : i32
    %c0_i32_1 = arith.constant 0 : i32
    return %arg0, %c0_i32, %c0_i32_0 : i32, i32, i32
  }
}

</mosaic_0001>

<bundles_post_ra>
// kernel: tpu_custom_call.1
= control target key start
LH: loop header
LB: loop body
LE: loop exit
PB: predicated region body
PF: predicated region fallthrough
CT: control target
= control target key end

     0   :  { %9 = vsyncpa [#allocation3], 0  ;;  %s401_s0 = inlined_call_operand.hbm [shape: f32[2,8,8], index: 0, kind: input, shape index: {}]   ;;  %s402_s1 = inlined_call_operand.hbm [shape: f32[2,8,16], index: 1, kind: input, shape index: {}]   ;;  %s403_s2 = inlined_call_operand.hbm [shape: f32[16,128], index: 2, kind: input, shape index: {}]   ;;  %s404_s3 = inlined_call_operand.vmem [shape: f32[1,128], index: 3, kind: input, shape index: {}]   ;;  %s405_s4 = inlined_call_operand.hbm [shape: f32[2,8,128], index: 4, kind: output, shape index: {}]  }
   0x1   :  { %10 = vsyncpa [#allocation6], 0 }
   0x2   :  { %11 = vsyncpa [#allocation4], 0  ;;  %s29_s17 = sshll.u32 %s402_s1, 4  ;;  %s338_s18 = smov [#allocation5]   ;;  %s30_s17 = int_to_ptr.hbm [resolvable:$true] %s29_s17 }
   0x3   :  { %s31_s19 = sshll.u32 %s338_s18, 4  ;;  %s16_s22 = sshll.u32 %s401_s0, 4  ;;  %s32_s19 = int_to_ptr.vmem [resolvable:$true] %s31_s19  ;;  %s17_s22 = int_to_ptr.hbm [resolvable:$true] %s16_s22 }
   0x4   :  { %s339_s23 = smov 128   ;;  %s340_s24 = smov 8  }
   0x5   :  { %37 = dma.hbm_to_vmem [thread:$0]  %s30_s17, 256, %s32_s19, [#allocation6], %s339_s23, %s339_s23, %s340_s24  }
   0x6   :  { %s341_s25 = smov [#allocation2]   ;;  %s42_s1 = sshll.u32 %s403_s2, 4  ;;  %s43_s1 = int_to_ptr.hbm [resolvable:$true] %s42_s1 }
   0x7   :  { %s18_s26 = sshll.u32 %s341_s25, 4  ;;  %s342_s0 = smov [#allocation7]   ;;  %s19_s26 = int_to_ptr.vmem [resolvable:$true] %s18_s26 }
   0x8   :  { %24 = dma.hbm_to_vmem [thread:$0]  %s17_s22, 256, %s19_s26, [#allocation3], %s339_s23, %s339_s23, %s340_s24  }
   0x9   :  { %s44_s29 = sshll.u32 %s342_s0, 4  ;;  %s45_s29 = int_to_ptr.vmem [resolvable:$true] %s44_s29 }
   0xa   :  { %50 = dma.hbm_to_vmem [thread:$0]  %s43_s1, 256, %s45_s29, [#allocation6], %s339_s23, %s339_s23, %s340_s24  }
   0xb   :  { %332 = dma.done.wait [#allocation3], 256  }
   0xc   :  { %333 = vsyncadd [#allocation3], 4294967040 }
   0xd   :  { %334 = dma.done.wait [#allocation6], 512  }
   0xe   :  { %335 = vsyncadd [#allocation6], 4294966784  ;;  %v65_v0 = vld [vmem:[#allocation2] sm:$0xff]  ;;  %vm78_vm0 = vcmask 64512   ;;  %v66_v1 = vld [vmem:[#allocation2 + $0x8] sm:$0xff]  ;;  %v343_v2 = vmov 0.0  }
   0xf   :  { %vm72_vm1 = vcmp.gt.f32.partialorder %v65_v0, 0.0  ;;  %vm73_vm2 = vcmp.gt.f32.partialorder %v66_v1, 0.0  ;;  %v67_v17 = vld [vmem:[#allocation5] sm:$0xff]  ;;  %v68_v25 = vld [vmem:[#allocation5 + $0x8] sm:$0xff]  ;;  %v70_v29 = vld [vmem:[#allocation7 + $0x8] sm:$0xff]  ;;  %vm159_vm11 = vcmask 130048  }
  0x10   :  { %v216_v3 = vsel %vm72_vm1, 1.0, %v343_v2  ;;  %v217_v5 = vsel %vm73_vm2, 1.0, %v343_v2  ;;  %180 = vmatpush.msra.mxu2 %v70_v29  ;;  %222 = vmatpush.msra.mxu3 %v70_v29  ;;  %v69_v30 = vld [vmem:[#allocation7] sm:$0xff]  ;;  %s344_s5 = smov [#allocation8]   ;;  %s202_s9 = sshll.u32 %s405_s4, 4  ;;  %s203_s9 = int_to_ptr.hbm [resolvable:$true] %s202_s9 }
  0x11   :  { %v79_v4 = vsel %vm78_vm0, %v216_v3, 0.0  ;;  %v82_v6 = vsel %vm78_vm0, %v217_v5, 0.0  ;;  %v231_v35 = vld [vmem:[%s404_s3] ss:$0 sm:$0xff]  ;;  %s200_s6 = sshll.u32 %s344_s5, 4  ;;  %s201_s6 = int_to_ptr.vmem [resolvable:$true] %s200_s6 }
  0x12   :  { %80 = vadd.xlane.f32.xlu0 %v79_v4  ;;  %181 = vmatpush.msra.mxu2 %v69_v30 }
  0x13   :  { %223 = vmatpush.msra.mxu3 %v69_v30 }
  0x1a   :  { %83 = vadd.xlane.f32.xlu0 %v82_v6 }
  0x85   :  { %v81_v7 = vpop.xlane.xlu0 %80 }
  0x86   :  { %232 = vrsqrt.f32 %v81_v7  ;;  %vm93_vm4 = vweird.f32 %v81_v7  ;;  %vm85_vm6 = vcmp.gt.f32.partialorder %v81_v7, 0.0 }
  0x8c   :  { %v233_v8 = vpop.eup %232 }
  0x8d   :  { %v88_v9 = vmul.f32 %v233_v8, %v81_v7  ;;  %v84_v10 = vpop.xlane.xlu0 %83  ;;  %vm94_vm3 = vweird.f32 %v233_v8 }
  0x8e   :  { %234 = vrsqrt.f32 %v84_v10  ;;  %vm95_vm5 = vmor %vm93_vm4, %vm94_vm3  ;;  %vm103_vm8 = vweird.f32 %v84_v10  ;;  %vm86_vm10 = vcmp.gt.f32.partialorder %v84_v10, 0.0 }
  0x8f   :  { %v89_v11 = vmul.f32 %v233_v8, %v88_v9 }
  0x91   :  { %v90_v12 = vmul.f32 0.5, %v89_v11 }
  0x93   :  { %v91_v13 = vsub.f32 1.5, %v90_v12 }
  0x94   :  { %v235_v14 = vpop.eup %234 }
  0x95   :  { %v98_v15 = vmul.f32 %v235_v14, %v84_v10  ;;  %v92_v16 = vmul.f32 %v233_v8, %v91_v13  ;;  %vm104_vm7 = vweird.f32 %v235_v14 }
  0x96   :  { %vm105_vm9 = vmor %vm103_vm8, %vm104_vm7 }
  0x97   :  { %v99_v18 = vmul.f32 %v235_v14, %v98_v15  ;;  %v96_v19 = vsel %vm95_vm5, %v233_v8, %v92_v16 }
  0x98   :  { %v107_v20 = vsel %vm85_vm6, %v96_v19, 0.0 }
  0x99   :  { %v100_v21 = vmul.f32 0.5, %v99_v18  ;;  %v109_v22 = vmul.f32 %v107_v20, %v67_v17 }
  0x9b   :  { %v101_v23 = vsub.f32 1.5, %v100_v21  ;;  %129 = vmatpush.msra.mxu0 %v109_v22 }
  0x9c   :  { %218 = vmatmul.msk.f32.vlgmr.msra.gmra.mxu0 %vm78_vm0, %v65_v0 }
  0x9d   :  { %v102_v24 = vmul.f32 %v235_v14, %v101_v23 }
  0x9f   :  { %v106_v26 = vsel %vm105_vm9, %v235_v14, %v102_v24 }
  0xa0   :  { %v108_v27 = vsel %vm86_vm10, %v106_v26, 0.0 }
  0xa1   :  { %v110_v28 = vmul.f32 %v108_v27, %v68_v25 }
  0xa3   :  { %152 = vmatpush.msra.mxu1 %v110_v28 }
  0xa4   :  { %219 = vmatmul.msk.f32.vlgmr.msra.gmra.mxu1 %vm78_vm0, %v66_v1 }
 0x119   :  { %v131_v31 = vpop.f32.mrf.mxu0 }
 0x11a   :  { %v157_v32 = vmul.f32 %v131_v31, %v107_v20 }
 0x11c   :  { %220 = vmatmul.msk.f32.vlgmr.msra.gmra.mxu2 %vm159_vm11, %v157_v32 }
 0x121   :  { %v154_v33 = vpop.f32.mrf.mxu1 }
 0x122   :  { %v158_v34 = vmul.f32 %v154_v33, %v108_v27 }
 0x124   :  { %221 = vmatmul.msk.f32.vlgmr.msra.gmra.mxu3 %vm159_vm11, %v158_v34 }
 0x19f   :  { %v183_v36 = vpop.f32.mrf.mxu2 }
 0x1a0   :  { %v192_v37 = vadd.f32 %v231_v35, %v183_v36 }
 0x1a2   :  { %194 = vst [vmem:[#allocation8] sm:$0xff] %v192_v37 }
 0x1a7   :  { %v186_v38 = vpop.f32.mrf.mxu3 }
 0x1a8   :  { %v193_v39 = vadd.f32 %v231_v35, %v186_v38 }
 0x1aa   :  { %195 = vst [vmem:[#allocation8 + $0x8] sm:$0xff] %v193_v39 }
 0x1ab   :  { %208 = dma.vmem_to_hbm [thread:$0]  %s201_s6, 256, %s203_s9, [#allocation4], %s339_s23, %s339_s23, %s340_s24  }
 0x1ac   :  { %336 = dma.done.wait [#allocation4], 256  }
 0x1ad   :  { %337 = vsyncadd [#allocation4], 4294967040 }
 0x1ae   :  { %213 = vsyncpa [#allocation3], 1 }
 0x1af   :  { %214 = vsyncpa [#allocation6], 1 }
 0x1b0   :  { %215 = vsyncpa [#allocation4], 1 }

</bundles_post_ra>
